<compile_context>
chip_gen: v5e
topology: v5e:2x2
jax: 0.10.0
libtpu: 0.0.40
codegen_flags: <defaults>
</compile_context>

<pallas_src>
import jax
import jax.numpy as jnp
from jax.experimental import pallas as pl
from jax.experimental.pallas import tpu as pltpu


# --------------------------------------------------------------------------- #
# Kernels
# --------------------------------------------------------------------------- #
def _sigmoid_eup(z):
    # sigmoid(z) = 1 / (1 + exp(-z)); exp and approximate reciprocal both run on
    # the EUP slot, avoiding a VALU Newton divide (matters on v7x).
    e = jnp.exp(-z)
    return pl.reciprocal(1.0 + e, approx=True)


def ms_cam_fused_kernel(x_ref, w1l_ref, b1l_ref, w2l_ref, b2l_ref,
                        w1g_ref, b1g_ref, w2g_ref, b2g_ref, out_ref):
    """One grid step per image: whole (C, HW) slab resident in VMEM."""
    x = x_ref[0]                                                     # (C, HW)
    x_op = x.astype(w1l_ref.dtype)                                   # matmul operand dtype

    # ---- local branch: 1x1 conv (+BN folded) -> ReLU -> 1x1 conv (+BN folded)
    h = jnp.dot(w1l_ref[...], x_op, preferred_element_type=jnp.float32)       # (Ci, HW)
    h = jnp.maximum(h + b1l_ref[...], 0.0)
    xl = jnp.dot(w2l_ref[...], h.astype(w2l_ref.dtype),
                 preferred_element_type=jnp.float32) + b2l_ref[...]           # (C, HW) f32

    # ---- global branch: adaptive-avg-pool(1) -> conv (+BN) -> ReLU -> conv (+BN)
    # Tiny (C,1)/(Ci,1) work, kept in f32.
    xm = jnp.mean(x.astype(jnp.float32), axis=-1, keepdims=True)              # (C, 1)
    hg = jnp.maximum(
        jnp.dot(w1g_ref[...], xm, preferred_element_type=jnp.float32)
        + b1g_ref[...], 0.0)                                                  # (Ci, 1)
    xg = jnp.dot(w2g_ref[...], hg,
                 preferred_element_type=jnp.float32) + b2g_ref[...]           # (C, 1)

    # ---- fuse + sigmoid (EUP), single lane-dense store
    out_ref[0] = _sigmoid_eup(xl + xg).astype(out_ref.dtype)


def ms_cam_tiled_kernel(x_ref, xg_ref, w1_ref, b1_ref, w2_ref, b2_ref, out_ref):
    """HW-tiled fallback: the global-branch result xg (1, C, 1) is precomputed."""
    x = x_ref[0]                                                     # (C, T)
    x_op = x.astype(w1_ref.dtype)

    h = jnp.dot(w1_ref[...], x_op, preferred_element_type=jnp.float32)        # (Ci, T)
    h = jnp.maximum(h + b1_ref[...], 0.0)
    xl = jnp.dot(w2_ref[...], h.astype(w2_ref.dtype),
                 preferred_element_type=jnp.float32) + b2_ref[...]            # (C, T) f32

    out_ref[0] = _sigmoid_eup(xl + xg_ref[0]).astype(out_ref.dtype)


# --------------------------------------------------------------------------- #
# Parameter prep (eval-mode BN folded into the 1x1 convs)
# --------------------------------------------------------------------------- #
def fold_bn_into_conv(w, b, gamma, beta, mean, var, eps=1e-5):
    """w: (Cout, Cin), b: (Cout,) -> (w_eff (Cout, Cin), b_eff (Cout, 1)) for y = w_eff @ x + b_eff."""
    scale = gamma / jnp.sqrt(var + eps)
    w_eff = w * scale[:, None]
    b_eff = (b - mean) * scale + beta
    return w_eff.astype(jnp.float32), b_eff[:, None].astype(jnp.float32)


# --------------------------------------------------------------------------- #
# VMEM-aware sizing helpers
# --------------------------------------------------------------------------- #
def _vmem_capacity_bytes():
    try:
        return int(pltpu.get_tpu_info().vmem_capacity_bytes)
    except Exception:
        return 64 * 1024 * 1024  # conservative (v7x per-TC); larger on v5e/v6e


def _fused_fits(HW, C, Ci, itemsize, vmem_cap):
    # Per HW element: double-buffered x/out tiles + f32 xl / f32 cast of x /
    # fused elementwise temporaries (~12*C) + h in f32 and matmul dtype (~8*Ci).
    per_lane = 4 * C * itemsize + 12 * C + 8 * Ci
    return HW * per_lane <= int(0.55 * vmem_cap)


def _pick_hw_tile(HW, C, Ci, itemsize, N, vmem_cap):
    # ~8 MiB budget: streaming kernels hit ~85% of HBM roofline at 512-1024 lanes,
    # larger tiles only burn VMEM headroom and pipeline steps.
    budget = min(8 * 1024 * 1024, vmem_cap // 4)
    per_lane = 4 * C * itemsize + 4 * (C + Ci) + Ci * itemsize  # DB'd x/out + f32 h, xl + h cast
    max_tile = max(128, (budget // per_lane) // 128 * 128)
    # Megacore (v7x has 2 TCs): aim for >= 4 total grid steps when N is small.
    hw_steps_wanted = pl.cdiv(4, N) if N < 4 else 1
    even_tile = max(128, pl.cdiv(pl.cdiv(HW, hw_steps_wanted), 128) * 128)
    tile = min(max_tile, even_tile)
    if tile >= HW:
        return HW  # full-dim block (always layout-legal)
    return tile


# --------------------------------------------------------------------------- #
# Wrapper
# --------------------------------------------------------------------------- #
def ms_cam_2d(x_nchw, params, *, force_tiled=False):
    """params: dict of BN-folded weights/biases (see make_params). Returns sigmoid(xl + xg)."""
    N, C, H, W = x_nchw.shape
    HW = H * W
    dtype = x_nchw.dtype
    itemsize = jnp.dtype(dtype).itemsize
    x = x_nchw.reshape(N, C, HW)                 # free reshape, no data movement
    Ci = params["w1l"].shape[0]
    vmem_cap = _vmem_capacity_bytes()

    # MXU operand dtype: preserve input dtype; drop f32 operands to bf16 (f32 acc)
    # when C is large so the matmul stays hidden under the DMA on v6e/v7x.
    mm_dtype = jnp.bfloat16 if (dtype == jnp.float32 and C >= 256) else dtype
    w1l = params["w1l"].astype(mm_dtype)
    w2l = params["w2l"].astype(mm_dtype)
    b1l = params["b1l"]                          # (Ci, 1) f32
    b2l = params["b2l"]                          # (C, 1) f32

    if (not force_tiled) and _fused_fits(HW, C, Ci, itemsize, vmem_cap):
        # -------- fused single-pass path: one grid step per image --------
        # TODO(synk): when N == 1 one v7x TensorCore idles; splitting HW would
        #             re-introduce an extra HBM read of x for the pooled mean.
        out = pl.pallas_call(
            ms_cam_fused_kernel,
            out_shape=jax.ShapeDtypeStruct((N, C, HW), dtype),
            grid_spec=pltpu.PrefetchScalarGridSpec(
                num_scalar_prefetch=0,
                grid=(N,),
                in_specs=[
                    pl.BlockSpec((1, C, HW), lambda n: (n, 0, 0)),   # x slab
                    pl.BlockSpec((Ci, C), lambda n: (0, 0)),         # local conv1
                    pl.BlockSpec((Ci, 1), lambda n: (0, 0)),
                    pl.BlockSpec((C, Ci), lambda n: (0, 0)),         # local conv2
                    pl.BlockSpec((C, 1), lambda n: (0, 0)),
                    pl.BlockSpec((Ci, C), lambda n: (0, 0)),         # global conv1 (f32)
                    pl.BlockSpec((Ci, 1), lambda n: (0, 0)),
                    pl.BlockSpec((C, Ci), lambda n: (0, 0)),         # global conv2 (f32)
                    pl.BlockSpec((C, 1), lambda n: (0, 0)),
                ],
                out_specs=pl.BlockSpec((1, C, HW), lambda n: (n, 0, 0)),
            ),
            compiler_params=pltpu.CompilerParams(
                dimension_semantics=("parallel",),
                vmem_limit_bytes=int(0.75 * vmem_cap),
            ),
        )(x, w1l, b1l, w2l, b2l,
          params["w1g"], params["b1g"], params["w2g"], params["b2g"])
        return out.reshape(N, C, H, W)

    # -------- tiled fallback: slab exceeds the VMEM budget --------
    # Global branch needs the full-HW mean, so it runs in plain JAX (one extra
    # read of x), O(N*C) afterwards; mean kept in f32.
    xm = jnp.mean(x.astype(jnp.float32), axis=-1)                              # (N, C)
    hg = jnp.maximum(xm @ params["w1g"].T + params["b1g"][:, 0], 0.0)          # (N, Ci)
    xg = (hg @ params["w2g"].T + params["b2g"][:, 0])[:, :, None]              # (N, C, 1) f32

    hw_tile = _pick_hw_tile(HW, C, Ci, itemsize, N, vmem_cap)
    grid = (N, pl.cdiv(HW, hw_tile))

    out = pl.pallas_call(
        ms_cam_tiled_kernel,
        out_shape=jax.ShapeDtypeStruct((N, C, HW), dtype),
        grid_spec=pltpu.PrefetchScalarGridSpec(
            num_scalar_prefetch=0,
            grid=grid,
            in_specs=[
                pl.BlockSpec((1, C, hw_tile), lambda n, t: (n, 0, t)),   # x tile
                pl.BlockSpec((1, C, 1), lambda n, t: (n, 0, 0)),         # global result
                pl.BlockSpec((Ci, C), lambda n, t: (0, 0)),              # w1 (resident)
                pl.BlockSpec((Ci, 1), lambda n, t: (0, 0)),              # b1
                pl.BlockSpec((C, Ci), lambda n, t: (0, 0)),              # w2
                pl.BlockSpec((C, 1), lambda n, t: (0, 0)),               # b2
            ],
            out_specs=pl.BlockSpec((1, C, hw_tile), lambda n, t: (n, 0, t)),
        ),
        compiler_params=pltpu.CompilerParams(
            dimension_semantics=("parallel", "parallel"),
            vmem_limit_bytes=min(32 * 1024 * 1024, int(0.5 * vmem_cap)),
        ),
    )(x, xg, w1l, b1l, w2l, b2l)
    return out.reshape(N, C, H, W)


# --------------------------------------------------------------------------- #
# Parameter construction + pure-JAX reference
# --------------------------------------------------------------------------- #
def make_params(key, channel, reduction):
    inter = channel // reduction
    keys = jax.random.split(key, 16)

    def conv_init(kw, kb, cout, cin):
        w = jax.random.normal(kw, (cout, cin), jnp.float32) * 0.1
        b = jax.random.normal(kb, (cout,), jnp.float32) * 0.05
        return w, b

    def bn_init(kg, kb, c):
        gamma = 1.0 + 0.1 * jax.random.normal(kg, (c,), jnp.float32)
        beta = 0.05 * jax.random.normal(kb, (c,), jnp.float32)
        mean = jnp.zeros((c,), jnp.float32)
        var = jnp.ones((c,), jnp.float32)
        return gamma, beta, mean, var

    # local branch
    wl1, bl1 = conv_init(keys[0], keys[1], inter, channel)
    bnl1 = bn_init(keys[2], keys[3], inter)
    wl2, bl2 = conv_init(keys[4], keys[5], channel, inter)
    bnl2 = bn_init(keys[6], keys[7], channel)
    # global branch
    wg1, bg1 = conv_init(keys[8], keys[9], inter, channel)
    bng1 = bn_init(keys[10], keys[11], inter)
    wg2, bg2 = conv_init(keys[12], keys[13], channel, inter)
    bng2 = bn_init(keys[14], keys[15], channel)

    w1l, b1l = fold_bn_into_conv(wl1, bl1, *bnl1)
    w2l, b2l = fold_bn_into_conv(wl2, bl2, *bnl2)
    w1g, b1g = fold_bn_into_conv(wg1, bg1, *bng1)
    w2g, b2g = fold_bn_into_conv(wg2, bg2, *bng2)
    return dict(w1l=w1l, b1l=b1l, w2l=w2l, b2l=b2l,
                w1g=w1g, b1g=b1g, w2g=w2g, b2g=b2g)


def ms_cam_2d_reference(x_nchw, params):
    """Pure-JAX reference (same folded params) for correctness checking."""
    N, C, H, W = x_nchw.shape
    x = x_nchw.reshape(N, C, H * W).astype(jnp.float32)
    h = jnp.maximum(jnp.einsum("ic,nch->nih", params["w1l"], x) + params["b1l"][None], 0.0)
    xl = jnp.einsum("ci,nih->nch", params["w2l"], h) + params["b2l"][None]
    xm = jnp.mean(x, axis=-1)
    hg = jnp.maximum(xm @ params["w1g"].T + params["b1g"][:, 0], 0.0)
    xg = hg @ params["w2g"].T + params["b2g"][:, 0]
    wei = jax.nn.sigmoid(xl + xg[:, :, None])
    return wei.reshape(N, C, H, W)


if __name__ == "__main__":
    # Small shapes consistent with the module: channel=16, reduction=4 -> inter=4
    N, C, H, W = 2, 16, 16, 16
    reduction = 4

    key = jax.random.PRNGKey(0)
    kx, kp = jax.random.split(key)
    x = jax.random.normal(kx, (N, C, H, W), jnp.float32)
    params = make_params(kp, C, reduction)

    ref = ms_cam_2d_reference(x, params)

    # Fused single-pass path (default for shapes that fit VMEM).
    out_fused = jax.block_until_ready(ms_cam_2d(x, params))
    assert out_fused.shape == (N, C, H, W)
    assert jnp.allclose(out_fused, ref, atol=2e-3, rtol=2e-3), "fused path mismatch vs reference"

    # HW-tiled fallback path (exercised explicitly to keep it correct).
    out_tiled = jax.block_until_ready(ms_cam_2d(x, params, force_tiled=True))
    assert jnp.allclose(out_tiled, ref, atol=2e-3, rtol=2e-3), "tiled path mismatch vs reference"

    print("KERNEL_OK")
</pallas_src>

<mosaic_0001>
module attributes {stable_mosaic.version = 11 : i64} {
  func.func @ms_cam_fused_kernel(%arg0: i32, %arg1: memref<1x16x256xf32, #tpu.memory_space<vmem>>, %arg2: memref<4x16xf32, #tpu.memory_space<vmem>>, %arg3: memref<4x1xf32, #tpu.memory_space<vmem>>, %arg4: memref<16x4xf32, #tpu.memory_space<vmem>>, %arg5: memref<16x1xf32, #tpu.memory_space<vmem>>, %arg6: memref<4x16xf32, #tpu.memory_space<vmem>>, %arg7: memref<4x1xf32, #tpu.memory_space<vmem>>, %arg8: memref<16x4xf32, #tpu.memory_space<vmem>>, %arg9: memref<16x1xf32, #tpu.memory_space<vmem>>, %arg10: memref<1x16x256xf32, #tpu.memory_space<vmem>>) attributes {dimension_semantics = [#tpu.dimension_semantics<parallel>], iteration_bounds = array<i64: 2>, scalar_prefetch = 0 : i64, scratch_operands = 0 : i64, tpu.core_type = #tpu.core_type<tc>, window_params = [{transform_indices = @transform_0, window_bounds = array<i64: 1, 16, 256>}, {pipeline_mode = #tpu.pipeline_mode<synchronous>, transform_indices = @transform_1, window_bounds = array<i64: 4, 16>}, {pipeline_mode = #tpu.pipeline_mode<synchronous>, transform_indices = @transform_2, window_bounds = array<i64: 4, 1>}, {pipeline_mode = #tpu.pipeline_mode<synchronous>, transform_indices = @transform_3, window_bounds = array<i64: 16, 4>}, {pipeline_mode = #tpu.pipeline_mode<synchronous>, transform_indices = @transform_4, window_bounds = array<i64: 16, 1>}, {pipeline_mode = #tpu.pipeline_mode<synchronous>, transform_indices = @transform_5, window_bounds = array<i64: 4, 16>}, {pipeline_mode = #tpu.pipeline_mode<synchronous>, transform_indices = @transform_6, window_bounds = array<i64: 4, 1>}, {pipeline_mode = #tpu.pipeline_mode<synchronous>, transform_indices = @transform_7, window_bounds = array<i64: 16, 4>}, {pipeline_mode = #tpu.pipeline_mode<synchronous>, transform_indices = @transform_8, window_bounds = array<i64: 16, 1>}, {transform_indices = @transform_9, window_bounds = array<i64: 1, 16, 256>}]} {
    %c0 = arith.constant 0 : index
    %c0_0 = arith.constant 0 : index
    %c0_1 = arith.constant 0 : index
    %0 = vector.load %arg1[%c0, %c0_0, %c0_1] : memref<1x16x256xf32, #tpu.memory_space<vmem>>, vector<1x16x256xf32>
    %1 = vector.shape_cast %0 : vector<1x16x256xf32> to vector<16x256xf32>
    %c0_2 = arith.constant 0 : index
    %c0_3 = arith.constant 0 : index
    %2 = vector.load %arg2[%c0_2, %c0_3] : memref<4x16xf32, #tpu.memory_space<vmem>>, vector<4x16xf32>
    %cst = arith.constant dense<0.000000e+00> : vector<4x256xf32>
    %3 = tpu.matmul %2, %1, %cst {dimension_numbers = #tpu.dot_dimension_numbers<[1], [0], [0], [1], [0, 0, 1, 1], [], []>} : vector<4x16xf32>, vector<16x256xf32>, vector<4x256xf32> -> vector<4x256xf32>
    %c0_4 = arith.constant 0 : index
    %c0_5 = arith.constant 0 : index
    %4 = vector.load %arg3[%c0_4, %c0_5] : memref<4x1xf32, #tpu.memory_space<vmem>>, vector<4x1xf32>
    %5 = vector.broadcast %4 : vector<4x1xf32> to vector<4x256xf32>
    %6 = arith.addf %3, %5 : vector<4x256xf32>
    %cst_6 = arith.constant 0.000000e+00 : f32
    %7 = vector.broadcast %cst_6 : f32 to vector<4x256xf32>
    %8 = arith.maximumf %6, %7 : vector<4x256xf32>
    %c0_7 = arith.constant 0 : index
    %c0_8 = arith.constant 0 : index
    %9 = vector.load %arg4[%c0_7, %c0_8] : memref<16x4xf32, #tpu.memory_space<vmem>>, vector<16x4xf32>
    %cst_9 = arith.constant dense<0.000000e+00> : vector<16x256xf32>
    %10 = tpu.matmul %9, %8, %cst_9 {dimension_numbers = #tpu.dot_dimension_numbers<[1], [0], [0], [1], [0, 0, 1, 1], [], []>} : vector<16x4xf32>, vector<4x256xf32>, vector<16x256xf32> -> vector<16x256xf32>
    %c0_10 = arith.constant 0 : index
    %c0_11 = arith.constant 0 : index
    %11 = vector.load %arg5[%c0_10, %c0_11] : memref<16x1xf32, #tpu.memory_space<vmem>>, vector<16x1xf32>
    %12 = vector.broadcast %11 : vector<16x1xf32> to vector<16x256xf32>
    %13 = arith.addf %10, %12 : vector<16x256xf32>
    %cst_12 = arith.constant dense<0.000000e+00> : vector<16xf32>
    %14 = vector.multi_reduction <add>, %1, %cst_12 [1] : vector<16x256xf32> to vector<16xf32>
    %15 = vector.shape_cast %14 : vector<16xf32> to vector<16x1xf32>
    %cst_13 = arith.constant 2.560000e+02 : f32
    %16 = vector.broadcast %cst_13 : f32 to vector<16x1xf32>
    %17 = arith.divf %15, %16 : vector<16x1xf32>
    %c0_14 = arith.constant 0 : index
    %c0_15 = arith.constant 0 : index
    %18 = vector.load %arg6[%c0_14, %c0_15] : memref<4x16xf32, #tpu.memory_space<vmem>>, vector<4x16xf32>
    %cst_16 = arith.constant dense<0.000000e+00> : vector<4x1xf32>
    %19 = tpu.matmul %18, %17, %cst_16 {dimension_numbers = #tpu.dot_dimension_numbers<[1], [0], [0], [1], [0, 0, 1, 1], [], []>} : vector<4x16xf32>, vector<16x1xf32>, vector<4x1xf32> -> vector<4x1xf32>
    %c0_17 = arith.constant 0 : index
    %c0_18 = arith.constant 0 : index
    %20 = vector.load %arg7[%c0_17, %c0_18] : memref<4x1xf32, #tpu.memory_space<vmem>>, vector<4x1xf32>
    %21 = arith.addf %19, %20 : vector<4x1xf32>
    %cst_19 = arith.constant 0.000000e+00 : f32
    %22 = vector.broadcast %cst_19 : f32 to vector<4x1xf32>
    %23 = arith.maximumf %21, %22 : vector<4x1xf32>
    %c0_20 = arith.constant 0 : index
    %c0_21 = arith.constant 0 : index
    %24 = vector.load %arg8[%c0_20, %c0_21] : memref<16x4xf32, #tpu.memory_space<vmem>>, vector<16x4xf32>
    %cst_22 = arith.constant dense<0.000000e+00> : vector<16x1xf32>
    %25 = tpu.matmul %24, %23, %cst_22 {dimension_numbers = #tpu.dot_dimension_numbers<[1], [0], [0], [1], [0, 0, 1, 1], [], []>} : vector<16x4xf32>, vector<4x1xf32>, vector<16x1xf32> -> vector<16x1xf32>
    %c0_23 = arith.constant 0 : index
    %c0_24 = arith.constant 0 : index
    %26 = vector.load %arg9[%c0_23, %c0_24] : memref<16x1xf32, #tpu.memory_space<vmem>>, vector<16x1xf32>
    %27 = arith.addf %25, %26 : vector<16x1xf32>
    %28 = vector.broadcast %27 : vector<16x1xf32> to vector<16x256xf32>
    %29 = arith.addf %13, %28 : vector<16x256xf32>
    %cst_25 = arith.constant 0.000000e+00 : f32
    %30 = vector.broadcast %cst_25 : f32 to vector<16x256xf32>
    %31 = arith.subf %30, %29 : vector<16x256xf32>
    %32 = math.exp %31 : vector<16x256xf32>
    %cst_26 = arith.constant 1.000000e+00 : f32
    %33 = vector.broadcast %cst_26 : f32 to vector<16x256xf32>
    %34 = arith.addf %33, %32 : vector<16x256xf32>
    %35 = tpu.reciprocal %34 {approx = true} : vector<16x256xf32> -> vector<16x256xf32>
    %c0_27 = arith.constant 0 : index
    %c0_28 = arith.constant 0 : index
    %c0_29 = arith.constant 0 : index
    %36 = vector.load %arg10[%c0_27, %c0_28, %c0_29] : memref<1x16x256xf32, #tpu.memory_space<vmem>>, vector<1x16x256xf32>
    %37 = vector.shape_cast %36 : vector<1x16x256xf32> to vector<16x256xf32>
    %38 = vector.shape_cast %35 : vector<16x256xf32> to vector<1x16x256xf32>
    tpu.vector_store %arg10[%c0_27, %c0_28, %c0_29], %38 {strides = array<i32>} : memref<1x16x256xf32, #tpu.memory_space<vmem>>, vector<1x16x256xf32>,
    return
  }
  func.func @transform_0(%arg0: i32) -> (i32, i32, i32) {
    %c0_i32 = arith.constant 0 : i32
    %c0_i32_0 = arith.constant 0 : i32
    %c0_i32_1 = arith.constant 0 : i32
    return %arg0, %c0_i32, %c0_i32_0 : i32, i32, i32
  }
  func.func @transform_1(%arg0: i32) -> (i32, i32) {
    %c0_i32 = arith.constant 0 : i32
    %c0_i32_0 = arith.constant 0 : i32
    %c0_i32_1 = arith.constant 0 : i32
    return %c0_i32, %c0_i32_0 : i32, i32
  }
  func.func @transform_2(%arg0: i32) -> (i32, i32) {
    %c0_i32 = arith.constant 0 : i32
    %c0_i32_0 = arith.constant 0 : i32
    %c0_i32_1 = arith.constant 0 : i32
    return %c0_i32, %c0_i32_0 : i32, i32
  }
  func.func @transform_3(%arg0: i32) -> (i32, i32) {
    %c0_i32 = arith.constant 0 : i32
    %c0_i32_0 = arith.constant 0 : i32
    %c0_i32_1 = arith.constant 0 : i32
    return %c0_i32, %c0_i32_0 : i32, i32
  }
  func.func @transform_4(%arg0: i32) -> (i32, i32) {
    %c0_i32 = arith.constant 0 : i32
    %c0_i32_0 = arith.constant 0 : i32
    %c0_i32_1 = arith.constant 0 : i32
    return %c0_i32, %c0_i32_0 : i32, i32
  }
  func.func @transform_5(%arg0: i32) -> (i32, i32) {
    %c0_i32 = arith.constant 0 : i32
    %c0_i32_0 = arith.constant 0 : i32
    %c0_i32_1 = arith.constant 0 : i32
    return %c0_i32, %c0_i32_0 : i32, i32
  }
  func.func @transform_6(%arg0: i32) -> (i32, i32) {
    %c0_i32 = arith.constant 0 : i32
    %c0_i32_0 = arith.constant 0 : i32
    %c0_i32_1 = arith.constant 0 : i32
    return %c0_i32, %c0_i32_0 : i32, i32
  }
  func.func @transform_7(%arg0: i32) -> (i32, i32) {
    %c0_i32 = arith.constant 0 : i32
    %c0_i32_0 = arith.constant 0 : i32
    %c0_i32_1 = arith.constant 0 : i32
    return %c0_i32, %c0_i32_0 : i32, i32
  }
  func.func @transform_8(%arg0: i32) -> (i32, i32) {
    %c0_i32 = arith.constant 0 : i32
    %c0_i32_0 = arith.constant 0 : i32
    %c0_i32_1 = arith.constant 0 : i32
    return %c0_i32, %c0_i32_0 : i32, i32
  }
  func.func @transform_9(%arg0: i32) -> (i32, i32, i32) {
    %c0_i32 = arith.constant 0 : i32
    %c0_i32_0 = arith.constant 0 : i32
    %c0_i32_1 = arith.constant 0 : i32
    return %arg0, %c0_i32, %c0_i32_0 : i32, i32, i32
  }
}

</mosaic_0001>

<bundles_post_ra>
// kernel: tpu_custom_call.1
= control target key start
LH: loop header
LB: loop body
LE: loop exit
PB: predicated region body
PF: predicated region fallthrough
CT: control target
= control target key end

     0   :  { %14 = vsyncpa [#allocation3], 0  ;;  %s1124_s0 = inlined_call_operand.hbm [shape: f32[2,16,256], index: 0, kind: input, shape index: {}]   ;;  %s1125_s1 = inlined_call_operand.vmem [shape: f32[4,16], index: 1, kind: input, shape index: {}]   ;;  %s1126_s2 = inlined_call_operand.vmem [shape: f32[4,1], index: 2, kind: input, shape index: {}]   ;;  %s1127_s3 = inlined_call_operand.vmem [shape: f32[16,4], index: 3, kind: input, shape index: {}]   ;;  %s1128_s4 = inlined_call_operand.vmem [shape: f32[16,1], index: 4, kind: input, shape index: {}]   ;;  %s1129_s5 = inlined_call_operand.vmem [shape: f32[4,16], index: 5, kind: input, shape index: {}]   ;;  %s1130_s6 = inlined_call_operand.vmem [shape: f32[4,1], index: 6, kind: input, shape index: {}]   ;;  %s1131_s7 = inlined_call_operand.vmem [shape: f32[16,4], index: 7, kind: input, shape index: {}]   ;;  %s1132_s8 = inlined_call_operand.vmem [shape: f32[16,1], index: 8, kind: input, shape index: {}]   ;;  %s1133_s9 = inlined_call_operand.hbm [shape: f32[2,16,256], index: 9, kind: output, shape index: {}]  }
   0x1   :  { %16 = vsyncpa [#allocation3 + $0x1], 0 }
   0x2   :  { %17 = vsyncpa [#allocation4], 0 }
   0x3   :  { %19 = vsyncpa [#allocation4 + $0x1], 0  ;;  %s944_s30 = smov 0   ;;  %s946_s10 = smov 0  }
   0x4   :  { %s948_s11 = smov 0   ;;  %s950_s12 = smov 0  }
   0x5 LB: > { %1137 = sst [smem:[#allocation8_spill]] %s882_s11  ;;  %s965_s13 = sadd.s32 4294967295, %s886_s12   ;;  %s886_s12 = sphi %s950_s12, %s1146_s12   ;;  %s882_s11 = sphi %s948_s11, %s1148_s11   ;;  %s878_s10 = sphi %s946_s10, %s1150_s10   ;;  %s874_s30 = sphi %s944_s30, %s1149_s30  }
   0x6   : > { %s688_s14 = sadd.s32 4294967294, %s886_s12   ;;  %s969_s15 = sadd.s32 1, %s886_s12  }
   0x7   : > { %1138 = sst [smem:[#allocation9_spill]] %s969_s15  ;;  %s32_s16 = sadd.s32 1, %s882_s11 }
   0x8   : > { %s29_s17 = ssub.s32 %s886_s12, %s969_s15  ;;  %p39_p0 = scmp.ne.s32.totalorder %s882_s11, %s878_s10 }
   0x9   : > { %p30_p1 = scmp.eq.s32.totalorder %s29_s17, 0  ;;  %p40_p2 = scmp.eq.s32.totalorder %s886_s12, 0 }
   0xa   : > { %p45_p3 = scmp.ne.s32.totalorder %s878_s10, %s874_s30  ;;  %p46_p4 = scmp.eq.s32.totalorder %s965_s13, 0 }
   0xb   : > { %s981_s18 = scalar_select %p30_p1, %s882_s11, %s32_s16  }
   0xc   : > { %p983_p5 = por %p40_p2, %p39_p0  ;;  %p987_p6 = por %p46_p4, %p45_p3 }
   0xd   : > { %1139 = sst [smem:[#allocation10_spill]] %s981_s18  ;;  %p237_p7 = scmp.eq.s32.totalorder %s965_s13, 1 }
   0xe   : > { %p243_p8 = scmp.eq.s32.totalorder %s688_s14, 1  ;;  %p729_p10 = scmp.lt.s32.totalorder %s886_s12, 2 }
   0xf   : > { %p994_p11 = por %p237_p7, %p39_p0  ;;  %s287_s23 = sand.u32 1, %s882_s11  }
  0x10   : > { %p998_p12 = por %p243_p8, %p45_p3  ;;  %s714_s24 = sshll.u32 %s886_s12, 5 }
  0x11   : > { %s691_s25 = sshll.u32 %s287_s23, 5  ;;  %s296_s28 = scalar_lea.hbm %s1124_s0, %s714_s24 }
  0x12   : > { %s297_s29 = sshll.u32 %s296_s28, 4  ;;  %s291_s14 = scalar_lea.vmem [#allocation2], %s691_s25  ;;  %s298_s29 = int_to_ptr.hbm [resolvable:$true] %s297_s29 }
  0x13   : > { %s299_s16 = sshll.u32 %s291_s14, 4  ;;  %p1009_p13 = pnand %p729_p10, %p983_p5  ;;  %s300_s16 = int_to_ptr.vmem [resolvable:$true] %s299_s16 }
  0x14   : > { %p694_p0 = scmp.ge.s32.totalorder %s886_s12, 1  ;;  %p307_p1 = scmp.lt.s32.totalorder %s886_s12, 3 }
  0x15   : > { %s288_s18 = scalar_lea.sflag [#allocation3], %s287_s23  ;;  %s790_s11 = sshra.s32 %s298_s29, 4  ;;  %s791_s11 = int_to_ptr.hbm [resolvable:$true] %s790_s11 }
  0x16   : > { %s792_s15 = scalar_lea.hbm %s791_s11, 32  ;;  %p794_p3 = pneg %p1009_p13 }
  0x17   : > { %p793_p2 = scmp.ne.s32.totalorder %s791_s11, %s792_s15  ;;  %s797_s19 = scalar_lea.hbm %s1124_s0, 64 }
  0x18   : > { %p798_p5 = scmp.lt.s32.totalorder %s791_s11, %s1124_s0  ;;  %p799_p8 = scmp.lt.s32.totalorder %s797_s19, %s792_s15 }
  0x19   : > { %p795_p4 = pnand %p794_p3, %p793_p2 }
  0x1a   : > { %p800_p10 = por %p799_p8, %p798_p5 }
  0x1b   : > { %p796_p7 = pneg %p795_p4 }
  0x1d   : > { %p801_p9 = pnand %p800_p10, %p796_p7 }
  0x1f   : > { %804 = shalt.err (!%p801_p9)
}
  0x20   : > { %s888_s23 = smov 256   ;;  %s889_s28 = smov 16  }
  0x21   : > { %724 = dma.hbm_to_vmem [thread:$0]  (!%p1009_p13), %s298_s29, 512, %s300_s16, %s288_s18, %s888_s23, %s888_s23, %s889_s28  }
  0x22   : > { %p308_p2 = pnand %p694_p0, %p307_p1 }
  0x23   : > { %s1030_s14 = sand.u32 (!%p308_p2), 1, %s878_s10  }
  0x24   : > { %311 = sbr.rel (%p308_p2) target bundleno = 579 (0x243), region = 56  ;;  %s695_s11 = sshll.u32 (!%p308_p2), %s1030_s14, 5 }
  0x25   : > { %s314_s15 = scalar_lea.sflag (!%p308_p2), [#allocation3], %s1030_s14  ;;  %s317_s24 = scalar_lea.vmem (!%p308_p2), [#allocation2], %s695_s11 }
  0x29   : > { %865 = dma.done.wait (%p987_p6), %s314_s15, 512  }
  0x2a   : > { %867 = vsyncadd (%p987_p6), %s314_s15, 4294966784  ;;  %v890_v0 = vmov 0   ;;  %v355_v1 = vld [vmem:[%s317_s24 + $0x10] sm:$0xff]  ;;  %v356_v2 = vld [vmem:[%s317_s24 + $0x18] sm:$0xff]  ;;  %vm364_vm0 = vcmask 130048   ;;  %v891_v9 = vmov 256.0  }
  0x2b   : > { %769 = vset.pattern.permute.xlu1 %v890_v0  ;;  %770 = vset.pattern.permute.xlu2 %v890_v0  ;;  %v353_v3 = vld [vmem:[%s317_s24] sm:$0xff]  ;;  %v487_v4 = vadd.f32 %v356_v2, %v355_v1  ;;  %v354_v5 = vld [vmem:[%s317_s24 + $0x8] sm:$0xff]  ;;  %772 = vrcp.f32 %v891_v9  ;;  %vm431_vm2 = vcmask 1043456   ;;  %vm424_vm3 = vcmask 31744   ;;  %s352_s15 = scalar_lea.vmem [#allocation5], %s695_s11  ;;  %s715_s24 = sshll.u32 %s965_s13, 5 }
  0x2c   : > { %771 = vset.pattern.permute.xlu0 %v890_v0  ;;  %382 = vmatpush.msra.mxu0 %v355_v1  ;;  %v357_v6 = vld [vmem:[%s1125_s1] sm:$0xf]  ;;  %v484_v8 = vadd.f32 %v354_v5, %v353_v3  ;;  %v411_v30 = vld [vmem:[%s1127_s3 + $0x8] sm:$0xff]  ;;  %s611_s29 = scalar_lea.hbm %s1133_s9, %s715_s24  ;;  %s612_s16 = sshll.u32 %s352_s15, 4  ;;  %s613_s16 = int_to_ptr.vmem [resolvable:$true] %s612_s16 }
  0x2d   : > { %402 = vmatpush.msra.mxu1 %v356_v2  ;;  %v358_v7 = vld [vmem:[%s1126_s2] sm:$0xf]  ;;  %488 = vadd.xlane.f32.xlu0 %v487_v4  ;;  %v413_v31 = vld [vmem:[%s1128_s4 + $0x8] sm:$0xff]  ;;  %s614_s17 = sshll.u32 %s611_s29, 4  ;;  %s600_s13 = scalar_lea.sflag [#allocation4], %s1030_s14  ;;  %s615_s17 = int_to_ptr.hbm [resolvable:$true] %s614_s17 }
  0x2e   : > { %361 = vperm.xlu1 %769, %v358_v7   ;;  %383 = vmatpush.msra.mxu0 %v353_v3  ;;  %v412_v10 = vld [vmem:[%s1128_s4] sm:$0xff]  ;;  %v526_v37 = vld [vmem:[%s1131_s7 + $0x8] sm:$0xff]  ;;  %s834_s20 = sshra.s32 %s615_s17, 4  ;;  %s840_s27 = scalar_lea.hbm %s1133_s9, 64  ;;  %s835_s20 = int_to_ptr.hbm [resolvable:$true] %s834_s20 }
  0x2f   : > { %403 = vmatpush.msra.mxu1 %v354_v5  ;;  %697 = vmatmul.msk.f32.vlgmr.msra.gmra.mxu0 %vm364_vm0, %v357_v6  ;;  %v499_v22 = vld [vmem:[%s1129_s5] sm:$0xf]  ;;  %v528_v43 = vld [vmem:[%s1132_s8 + $0x8] sm:$0xff]  ;;  %s836_s25 = scalar_lea.hbm %s835_s20, 32  ;;  %p841_p0 = scmp.lt.s32.totalorder %s835_s20, %s1133_s9 }
  0x30   : > { %698 = vmatmul.msk.f32.vlgmr.msra.gmra.mxu1 %vm364_vm0, %v357_v6  ;;  %v410_v28 = vld [vmem:[%s1127_s3] sm:$0xff]  ;;  %421 = vperm.xlu2 %770, %v413_v31   ;;  %p837_p6 = scmp.ne.s32.totalorder %s835_s20, %s836_s25  ;;  %p842_p1 = scmp.lt.s32.totalorder %s840_s27, %s836_s25 }
  0x31   : > { %v773_v11 = vpop.eup %772  ;;  %v500_v32 = vld [vmem:[%s1130_s6] sm:$0xf] }
  0x32   : > { %v491_v12 = vmul.f32 256.0, %v773_v11  ;;  %vm495_vm1 = vweird.f32 %v773_v11  ;;  %v525_v36 = vld [vmem:[%s1131_s7] sm:$0xff]  ;;  %p838_p9 = pnand %p837_p6, %p994_p11  ;;  %p843_p3 = por %p842_p1, %p841_p0 }
  0x33   : > { %v527_v40 = vld [vmem:[%s1132_s8] sm:$0xff] }
  0x34   : > { %v492_v13 = vsub.f32 1.0, %v491_v12  ;;  %p839_p13 = pneg %p838_p9 }
  0x35   : > { %485 = vadd.xlane.f32.xlu0 %v484_v8 }
  0x36   : > { %416 = vperm.xlu1 %769, %v412_v10   ;;  %v493_v14 = vmul.f32 %v773_v11, %v492_v13  ;;  %p844_p4 = pnand %p843_p3, %p839_p13 }
  0x38   : > { %v494_v15 = vadd.f32 %v773_v11, %v493_v14 }
  0x3a   : > { %v496_v16 = vsel %vm495_vm1, %v773_v11, %v494_v15 }
  0x8a   : > { %v422_v46 = vpop.permute.xlu2 %421 }
  0xa0   : > { %v489_v17 = vpop.xlane.xlu0 %488  ;;  %v362_v21 = vpop.permute.xlu1 %361 }
  0xa1   : > { %v498_v18 = vmul.f32 %v496_v16, %v489_v17 }
  0xa3   : > { %518 = vmatpush.msrb.mxu0 %v498_v18 }
  0xa8   : > { %v486_v19 = vpop.xlane.xlu0 %485  ;;  %v417_v48 = vpop.permute.xlu1 %416 }
  0xa9   : > { %v497_v20 = vmul.f32 %v496_v16, %v486_v19 }
  0xab   : > { %519 = vmatpush.msrb.mxu0 %v497_v20 }
  0xac   : > { %v385_v23 = vpop.f32.mrf.mxu0  ;;  %705 = vmatmul.msk.f32.vlgmr.msrb.gmra.mxu0 %vm364_vm0, %v499_v22 }
  0xad   : > { %v386_v24 = vadd.f32 %v385_v23, %v362_v21  ;;  %v405_v25 = vpop.f32.mrf.mxu1 }
  0xae   : > { %v406_v26 = vadd.f32 %v405_v25, %v362_v21 }
  0xaf   : > { %v408_v27 = vmax.f32 %v386_v24, 0.0 }
  0xb0   : > { %v409_v29 = vmax.f32 %v406_v26, 0.0 }
  0xb1   : > { %699 = vmatpush.msk.msra.mxu2 %vm431_vm2, %v408_v27 }
  0xb2   : > { %702 = vmatpush.msk.msra.mxu3 %vm431_vm2, %v409_v29  ;;  %700 = vmatmul.msk.f32.vlgmr.msra.gmra.mxu2 %vm424_vm3, %v410_v28 }
  0xb3   : > { %703 = vmatmul.msk.f32.vlgmr.msra.gmra.mxu3 %vm424_vm3, %v410_v28 }
  0xba   : > { %701 = vmatmul.msk.f32.gmra.mxu2 %vm424_vm3, %v411_v30 }
  0xbb   : > { %704 = vmatmul.msk.f32.gmra.mxu3 %vm424_vm3, %v411_v30 }
 0x129   : > { %v521_v33 = vpop.f32.mrf.mxu0 }
 0x12a   : > { %v522_v34 = vadd.f32 %v521_v33, %v500_v32 }
 0x12c   : > { %v524_v35 = vmax.f32 %v522_v34, 0.0 }
 0x12e   : > { %706 = vmatpush.msk.msrb.mxu1 %vm431_vm2, %v524_v35  ;;  %716 = vmatpush.msk.msrb.mxu2 %vm431_vm2, %v524_v35 }
 0x12f   : > { %707 = vmatmul.msk.f32.vlgmr.msrb.gmra.mxu1 %vm424_vm3, %v525_v36  ;;  %708 = vmatmul.msk.f32.vlgmr.msrb.gmra.mxu2 %vm424_vm3, %v526_v37 }
 0x135   : > { %v455_v38 = vpop.f32.mrf.mxu2 }
 0x136   : > { %v478_v47 = vpop.f32.mrf.mxu3  ;;  %v456_v49 = vadd.f32 %v455_v38, %v417_v48 }
 0x137   : > { %v479_v50 = vadd.f32 %v478_v47, %v417_v48 }
 0x13d   : > { %v458_v39 = vpop.f32.mrf.mxu2 }
 0x13e   : > { %v481_v0 = vpop.f32.mrf.mxu3  ;;  %v459_v1 = vadd.f32 %v458_v39, %v422_v46 }
 0x13f   : > { %v482_v2 = vadd.f32 %v481_v0, %v422_v46 }
 0x1ac   : > { %v555_v41 = vpop.f32.mrf.mxu1 }
 0x1ad   : > { %v556_v42 = vadd.f32 %v555_v41, %v527_v40 }
 0x1af   : > { %563 = vperm.xlu2 %770, %v556_v42  }
 0x1b2   : > { %v558_v44 = vpop.f32.mrf.mxu2 }
 0x1b3   : > { %v559_v45 = vadd.f32 %v558_v44, %v528_v43 }
 0x1b5   : > { %568 = vperm.xlu0 %771, %v559_v45  }
 0x209   : > { %v564_v51 = vpop.permute.xlu2 %563 }
 0x20a   : > { %v571_v52 = vadd.f32 %v564_v51, %v456_v49  ;;  %v572_v53 = vadd.f32 %v564_v51, %v479_v50 }
 0x20c   : > { %v575_v54 = vsub.f32 0.0, %v571_v52  ;;  %v576_v55 = vsub.f32 0.0, %v572_v53 }
 0x20e   : > { %v579_v56 = vmul.f32 1.442695, %v575_v54  ;;  %v581_v57 = vmul.f32 1.442695, %v576_v55 }
 0x210   : > { %774 = vpow2.f32 %v579_v56 }
 0x211   : > { %776 = vpow2.f32 %v581_v57 }
 0x216   : > { %v775_v58 = vpop.eup %774 }
 0x217   : > { %v777_v59 = vpop.eup %776  ;;  %v587_v60 = vadd.f32 1.0, %v775_v58 }
 0x218   : > { %v588_v61 = vadd.f32 1.0, %v777_v59 }
 0x219   : > { %778 = vrcp.f32 %v587_v60 }
 0x21a   : > { %780 = vrcp.f32 %v588_v61 }
 0x21f   : > { %v779_v62 = vpop.eup %778 }
 0x220   : > { %v781_v63 = vpop.eup %780  ;;  %595 = vst [vmem:[%s352_s15] sm:$0xff] %v779_v62 }
 0x221   : > { %596 = vst [vmem:[%s352_s15 + $0x8] sm:$0xff] %v781_v63 }
 0x227   : > { %v569_v3 = vpop.permute.xlu0 %568 }
 0x228   : > { %v573_v4 = vadd.f32 %v569_v3, %v459_v1  ;;  %v574_v5 = vadd.f32 %v569_v3, %v482_v2 }
 0x22a   : > { %v577_v6 = vsub.f32 0.0, %v573_v4  ;;  %v578_v7 = vsub.f32 0.0, %v574_v5 }
 0x22c   : > { %v583_v8 = vmul.f32 1.442695, %v577_v6  ;;  %v585_v9 = vmul.f32 1.442695, %v578_v7 }
 0x22e   : > { %782 = vpow2.f32 %v583_v8 }
 0x22f   : > { %784 = vpow2.f32 %v585_v9 }
 0x234   : > { %v783_v10 = vpop.eup %782 }
 0x235   : > { %v785_v11 = vpop.eup %784  ;;  %v589_v12 = vadd.f32 1.0, %v783_v10 }
 0x236   : > { %v590_v13 = vadd.f32 1.0, %v785_v11 }
 0x237   : > { %786 = vrcp.f32 %v589_v12 }
 0x238   : > { %788 = vrcp.f32 %v590_v13 }
 0x23d   : > { %v787_v14 = vpop.eup %786 }
 0x23e   : > { %v789_v15 = vpop.eup %788  ;;  %597 = vst [vmem:[%s352_s15 + $0x10] sm:$0xff] %v787_v14 }
 0x23f   : > { %598 = vst [vmem:[%s352_s15 + $0x18] sm:$0xff] %v789_v15 }
 0x240   : > { %847 = shalt.err (!%p844_p4)
}
 0x241   : > { %s892_s14 = smov 256   ;;  %s893_s15 = smov 16  }
 0x242   : > { %719 = dma.vmem_to_hbm [thread:$0]  (%p994_p11), %s613_s16, 512, %s615_s17, %s600_s13, %s892_s14, %s892_s14, %s893_s15  }
 0x243 PF: > { %s629_s24 = sand.u32 1, %s874_s30   ;;  %p1145_p7 = scmp.ge.s32.totalorder %s886_s12, 2 }
 0x244   : > { %s630_s11 = scalar_lea.sflag [#allocation4], %s629_s24 }
 0x245   : > { %p726_p5 = pnand %p1145_p7, %p998_p12 }
 0x247   : > { %p727_p8 = pneg %p726_p5 }
 0x249   : > { %869 = dma.done.wait (%p727_p8), %s630_s11, 512  }
 0x24a   : > { %871 = vsyncadd (%p727_p8), %s630_s11, 4294966784  ;;  %s1146_s12 = sld [smem:[#allocation9_spill]]  ;;  %s1149_s30 = smov %s878_s10 }
 0x24b   : > { %s1147_s18 = sld [smem:[#allocation8_spill]] }
 0x24c   : > { %s1148_s11 = sld [smem:[#allocation10_spill]] }
 0x250   : > { %p22_p10 = scmp.ge.s32.totalorder %s1146_s12, 4  }
 0x251   : > { %s1150_s10 = smov %s1147_s18 }
 0x252   :  { %24 = sbr.rel (!%p22_p10) target bundleno = 5 (0x5), region = 101 }
 0x257   :  { %636 = vsyncpa [#allocation3], 1 }
 0x258   :  { %638 = vsyncpa [#allocation3 + $0x1], 1 }
 0x259   :  { %639 = vsyncpa [#allocation4], 1 }
 0x25a   :  { %641 = vsyncpa [#allocation4 + $0x1], 1 }

</bundles_post_ra>
